<compile_context>
chip_gen: v6e
topology: v6e:2x2x1
jax: 0.10.0
libtpu: 0.0.40
codegen_flags: <defaults>
</compile_context>

<pallas_src>
import jax
import jax.numpy as jnp
from jax.experimental import pallas as pl
from jax.experimental.pallas import tpu as pltpu


def _round_up(v, m):
    return (v + m - 1) // m * m


def _choose_tiles(B, C, HW, itemsize, target_bytes, hw_tile):
    """Pick (TB, THW, n_hw): batch-tile, H*W tile (mult of 128 or full), #hw steps."""
    if hw_tile is not None:
        if hw_tile >= HW:
            THW = HW
        else:
            THW = max(128, _round_up(int(hw_tile), 128))
            if THW >= HW:
                THW = HW
    else:
        lanes = (target_bytes // max(1, C * itemsize)) // 128 * 128
        lanes = max(lanes, 128)
        THW = HW if lanes >= HW else lanes
    n_hw = pl.cdiv(HW, THW)

    # Batch tiling only when the whole spatial extent fits in one block
    # (otherwise the running accumulators stream over H*W with TB == 1).
    TB = 1
    if THW == HW:
        desired = max(1, target_bytes // max(1, C * HW * itemsize))
        desired = min(desired, B)
        for d in range(desired, 0, -1):      # largest divisor of B <= desired
            if B % d == 0:
                TB = d
                break
    return TB, THW, n_hw


def _make_kernel(C, HW, TB, THW):
    needs_mask = (HW % THW) != 0
    inv_hw = 1.0 / float(HW)

    def kernel(x_ref, w1t_ref, w2t_ref, o_ref, max_sc, sum_sc):
        # x_ref:   (TB, C, THW)  batch-tile x spatial-tile
        # w1t_ref: (C, hidden)   conv1 1x1 weight, pre-transposed (lane-dense SE)
        # w2t_ref: (hidden, C)   conv2 1x1 weight, pre-transposed
        # o_ref:   (TB, 1, C)    lane-dense per-channel gate
        # max_sc / sum_sc: (TB, C) f32 running accumulators (C on lanes)
        hw_step = pl.program_id(1)
        n_hw = pl.num_programs(1)
        is_last = hw_step == n_hw - 1

        @pl.when(hw_step == 0)
        def _():
            max_sc[...] = jnp.full_like(max_sc, -jnp.inf)
            sum_sc[...] = jnp.zeros_like(sum_sc)

        x = x_ref[...]                        # input dtype (bf16 stays bf16 for max)
        xf = x.astype(jnp.float32)            # f32 accumulation for the mean

        def accum(x_for_max, x_for_sum):
            max_sc[...] = jnp.maximum(
                max_sc[...], jnp.max(x_for_max, axis=-1).astype(jnp.float32))
            sum_sc[...] = sum_sc[...] + jnp.sum(x_for_sum, axis=-1)

        if needs_mask:
            # Only the LAST hw step is ragged: keep an unmasked fast path for
            # interior steps, pay the iota/compare/selects once at the end.
            @pl.when(hw_step < n_hw - 1)
            def _():
                accum(x, xf)

            @pl.when(is_last)
            def _():
                pos = hw_step * THW + jax.lax.broadcasted_iota(jnp.int32, x.shape, 2)
                valid = pos < HW
                neg = jnp.array(-jnp.inf, dtype=x.dtype)
                accum(jnp.where(valid, x, neg), jnp.where(valid, xf, 0.0))
        else:
            accum(x, xf)

        @pl.when(is_last)
        def _():
            mx = max_sc[...]                            # (TB, C)  AdaptiveMaxPool2d(1)
            av = sum_sc[...] * inv_hw                   # (TB, C)  AdaptiveAvgPool2d(1)
            pooled = jnp.concatenate([mx, av], axis=0)  # (2*TB, C), C lane-dense
            # Shared-weight SE applied to both pooled vectors of every image at once.
            h = jnp.maximum(
                jnp.dot(pooled, w1t_ref[...].astype(jnp.float32),
                        preferred_element_type=jnp.float32), 0.0)     # (2*TB, hidden)
            y = jnp.dot(h, w2t_ref[...].astype(jnp.float32),
                        preferred_element_type=jnp.float32)           # (2*TB, C)
            out = jax.nn.sigmoid(y[:TB] + y[TB:])                     # (TB, C)
            o_ref[:, 0, :] = out.astype(o_ref.dtype)

    return kernel


def channel_attention(x, w1, w2, *, hw_tile=None, target_block_bytes=4 * 1024 * 1024):
    """x: (B, C, H, W). w1: (C//r, C) conv1 1x1 weight. w2: (C, C//r) conv2 1x1 weight.

    Returns the per-channel gate, shape (B, C, 1, 1), matching
    sigmoid(se(maxpool(x)) + se(avgpool(x))) of the PyTorch module.
    Output dtype follows x.dtype. target_block_bytes of 2-8 MiB is safe on
    v7x; up to ~16 MiB is fine on v5e/v6e for huge feature maps.
    """
    if w1.ndim == 4:
        w1 = w1.reshape(w1.shape[0], w1.shape[1])
    if w2.ndim == 4:
        w2 = w2.reshape(w2.shape[0], w2.shape[1])

    B, C, H, W = x.shape
    hidden = w1.shape[0]
    HW = H * W
    x_flat = x.reshape(B, C, HW)
    itemsize = jnp.dtype(x.dtype).itemsize

    TB, THW, n_hw = _choose_tiles(B, C, HW, itemsize, target_block_bytes, hw_tile)

    # Pre-transpose the 1x1-conv weights once (layout plumbing, outside the
    # hot loop) so the in-kernel SE matmuls are lane-dense.
    w1t = w1.T  # (C, hidden)
    w2t = w2.T  # (hidden, C)

    kernel = _make_kernel(C=C, HW=HW, TB=TB, THW=THW)

    x_index_map = lambda b, h: (b, 0, h)
    block_bytes = TB * C * THW * itemsize
    x_spec = pl.BlockSpec((TB, C, THW), x_index_map)
    if n_hw >= 4 and block_bytes <= (1 << 20):
        # Many small steps: deepen the input pipeline to hide DMA issue latency.
        try:
            x_spec = pl.BlockSpec((TB, C, THW), x_index_map,
                                  pipeline_mode=pl.Buffered(3))
        except TypeError:  # older jax without pipeline_mode on BlockSpec
            x_spec = pl.BlockSpec((TB, C, THW), x_index_map)

    cost = pl.CostEstimate(
        flops=2 * B * C * HW + 2 * (2 * B) * (2 * C * hidden),
        transcendentals=B * C,
        bytes_accessed=B * C * HW * itemsize
        + 2 * C * hidden * jnp.dtype(w1.dtype).itemsize
        + B * C * itemsize,
    )

    out = pl.pallas_call(
        kernel,
        out_shape=jax.ShapeDtypeStruct((B, 1, C), x.dtype),
        grid_spec=pltpu.PrefetchScalarGridSpec(
            num_scalar_prefetch=0,
            grid=(B // TB, n_hw),  # batch-blocks parallel, H*W reduction innermost
            in_specs=[
                x_spec,
                pl.BlockSpec((C, hidden), lambda b, h: (0, 0)),
                pl.BlockSpec((hidden, C), lambda b, h: (0, 0)),
            ],
            out_specs=pl.BlockSpec((TB, 1, C), lambda b, h: (b, 0, 0)),
            scratch_shapes=[
                pltpu.VMEM((TB, C), jnp.float32),  # running max (lane-dense)
                pltpu.VMEM((TB, C), jnp.float32),  # running sum (f32 even for bf16 x)
            ],
        ),
        compiler_params=pltpu.CompilerParams(
            dimension_semantics=("parallel", "arbitrary"),
            vmem_limit_bytes=48 * 1024 * 1024,  # fits v7x (64 MiB), headroom on v5e/v6e
        ),
        cost_estimate=cost,
    )(x_flat, w1t, w2t)

    return out.reshape(B, C, 1, 1)


def channel_attention_ref(x, w1, w2):
    # Pure-JAX reference of the PyTorch forward.
    mx = jnp.max(x, axis=(2, 3))   # (B, C)
    av = jnp.mean(x, axis=(2, 3))  # (B, C)

    def se(v):                      # v: (B, C)
        h = jnp.maximum(v @ w1.T, 0.0)  # (B, C//r)
        return h @ w2.T                 # (B, C)

    out = jax.nn.sigmoid(se(mx) + se(av))
    return out[:, :, None, None]


if __name__ == "__main__":
    key = jax.random.PRNGKey(0)
    kx, k1, k2, kx2, kx3 = jax.random.split(key, 5)

    B, C, reduction = 2, 64, 16
    hidden = C // reduction  # 4

    # Deterministic synthetic weights (Conv2d 1x1, bias=False), squeezed to 2D.
    w1 = jax.random.normal(k1, (hidden, C), dtype=jnp.float32) * 0.1  # (C//r, C, 1, 1)
    w2 = jax.random.normal(k2, (C, hidden), dtype=jnp.float32) * 0.1  # (C, C//r, 1, 1)

    # Case 1: small spatial map -> whole H*W in one block, batch tiled (TB = 2).
    x1 = jax.random.normal(kx, (B, C, 16, 16), dtype=jnp.float32)
    r1 = channel_attention_ref(x1, w1, w2)
    o1 = jax.block_until_ready(channel_attention(x1, w1, w2))
    assert o1.shape == (B, C, 1, 1)
    assert jnp.allclose(o1, r1, atol=1e-5, rtol=1e-5)

    # Case 2: forced H*W tiling -> streaming running-max / running-sum path.
    o2 = jax.block_until_ready(channel_attention(x1, w1, w2, hw_tile=128))
    assert jnp.allclose(o2, r1, atol=1e-5, rtol=1e-5)

    # Case 3: ragged tail (H*W = 320; tile request 100 is rounded up to 128 ->
    # 3 steps, only the last one masked).
    x3 = jax.random.normal(kx2, (B, C, 16, 20), dtype=jnp.float32)
    r3 = channel_attention_ref(x3, w1, w2)
    o3 = jax.block_until_ready(channel_attention(x3, w1, w2, hw_tile=100))
    assert jnp.allclose(o3, r3, atol=1e-5, rtol=1e-5)

    # Case 4: bf16 input (bf16 max path, f32 sum accumulation, bf16 gate out).
    x4 = x1.astype(jnp.bfloat16)
    r4 = channel_attention_ref(x4.astype(jnp.float32), w1, w2)
    o4 = jax.block_until_ready(channel_attention(x4, w1, w2))
    assert o4.dtype == jnp.bfloat16
    assert jnp.allclose(o4.astype(jnp.float32), r4, atol=2e-2, rtol=2e-2)

    # Case 5: B = 1 with many small H*W steps -> exercises the deeper
    # (Buffered(3)) input pipeline path.
    x5 = jax.random.normal(kx3, (1, C, 64, 64), dtype=jnp.float32)
    r5 = channel_attention_ref(x5, w1, w2)
    o5 = jax.block_until_ready(channel_attention(x5, w1, w2, hw_tile=512))
    assert jnp.allclose(o5, r5, atol=1e-5, rtol=1e-5)

    print("KERNEL_OK")
</pallas_src>

<mosaic_0001>
module attributes {stable_mosaic.version = 11 : i64} {
  func.func @kernel(%arg0: i32, %arg1: i32, %arg2: memref<2x64x256xf32, #tpu.memory_space<vmem>>, %arg3: memref<64x4xf32, #tpu.memory_space<vmem>>, %arg4: memref<4x64xf32, #tpu.memory_space<vmem>>, %arg5: memref<2x1x64xf32, #tpu.memory_space<vmem>>, %arg6: memref<2x64xf32, #tpu.memory_space<vmem>>, %arg7: memref<2x64xf32, #tpu.memory_space<vmem>>) attributes {dimension_semantics = [#tpu.dimension_semantics<parallel>, #tpu.dimension_semantics<arbitrary>], iteration_bounds = array<i64: 1, 1>, scalar_prefetch = 0 : i64, scratch_operands = 2 : i64, tpu.core_type = #tpu.core_type<tc>, window_params = [{transform_indices = @transform_0, window_bounds = array<i64: 2, 64, 256>}, {pipeline_mode = #tpu.pipeline_mode<synchronous>, transform_indices = @transform_1, window_bounds = array<i64: 64, 4>}, {pipeline_mode = #tpu.pipeline_mode<synchronous>, transform_indices = @transform_2, window_bounds = array<i64: 4, 64>}, {transform_indices = @transform_3, window_bounds = array<i64: 2, 1, 64>}]} {
    %c0_i32 = arith.constant 0 : i32
    %0 = arith.cmpi eq, %arg1, %c0_i32 : i32
    %c0_i32_0 = arith.constant 0 : i32
    %1 = arith.cmpi eq, %arg1, %c0_i32_0 : i32
    %2 = arith.extui %1 : i1 to i32
    %c0_i32_1 = arith.constant 0 : i32
    %3 = arith.cmpi ne, %2, %c0_i32_1 : i32
    scf.if %3 {
      %cst_14 = arith.constant 0xFF800000 : f32
      %15 = vector.broadcast %cst_14 : f32 to vector<2x64xf32>
      %c0_15 = arith.constant 0 : index
      %c0_16 = arith.constant 0 : index
      %16 = vector.load %arg6[%c0_15, %c0_16] : memref<2x64xf32, #tpu.memory_space<vmem>>, vector<2x64xf32>
      tpu.vector_store %arg6[%c0_15, %c0_16], %15 {strides = array<i32>} : memref<2x64xf32, #tpu.memory_space<vmem>>, vector<2x64xf32>,
      %cst_17 = arith.constant 0.000000e+00 : f32
      %17 = vector.broadcast %cst_17 : f32 to vector<2x64xf32>
      %c0_18 = arith.constant 0 : index
      %c0_19 = arith.constant 0 : index
      %18 = vector.load %arg7[%c0_18, %c0_19] : memref<2x64xf32, #tpu.memory_space<vmem>>, vector<2x64xf32>
      tpu.vector_store %arg7[%c0_18, %c0_19], %17 {strides = array<i32>} : memref<2x64xf32, #tpu.memory_space<vmem>>, vector<2x64xf32>,
    } else {
    }
    %c0 = arith.constant 0 : index
    %c0_2 = arith.constant 0 : index
    %c0_3 = arith.constant 0 : index
    %4 = vector.load %arg2[%c0, %c0_2, %c0_3] : memref<2x64x256xf32, #tpu.memory_space<vmem>>, vector<2x64x256xf32>
    %c0_4 = arith.constant 0 : index
    %c0_5 = arith.constant 0 : index
    %5 = vector.load %arg6[%c0_4, %c0_5] : memref<2x64xf32, #tpu.memory_space<vmem>>, vector<2x64xf32>
    %cst = arith.constant dense<0xFF800000> : vector<2x64xf32>
    %6 = vector.multi_reduction <maximumf>, %4, %cst [2] : vector<2x64x256xf32> to vector<2x64xf32>
    %7 = arith.maximumf %5, %6 : vector<2x64xf32>
    %c0_6 = arith.constant 0 : index
    %c0_7 = arith.constant 0 : index
    %8 = vector.load %arg6[%c0_6, %c0_7] : memref<2x64xf32, #tpu.memory_space<vmem>>, vector<2x64xf32>
    tpu.vector_store %arg6[%c0_6, %c0_7], %7 {strides = array<i32>} : memref<2x64xf32, #tpu.memory_space<vmem>>, vector<2x64xf32>,
    %c0_8 = arith.constant 0 : index
    %c0_9 = arith.constant 0 : index
    %9 = vector.load %arg7[%c0_8, %c0_9] : memref<2x64xf32, #tpu.memory_space<vmem>>, vector<2x64xf32>
    %cst_10 = arith.constant dense<0.000000e+00> : vector<2x64xf32>
    %10 = vector.multi_reduction <add>, %4, %cst_10 [2] : vector<2x64x256xf32> to vector<2x64xf32>
    %11 = arith.addf %9, %10 : vector<2x64xf32>
    %c0_11 = arith.constant 0 : index
    %c0_12 = arith.constant 0 : index
    %12 = vector.load %arg7[%c0_11, %c0_12] : memref<2x64xf32, #tpu.memory_space<vmem>>, vector<2x64xf32>
    tpu.vector_store %arg7[%c0_11, %c0_12], %11 {strides = array<i32>} : memref<2x64xf32, #tpu.memory_space<vmem>>, vector<2x64xf32>,
    %13 = arith.extui %0 : i1 to i32
    %c0_i32_13 = arith.constant 0 : i32
    %14 = arith.cmpi ne, %13, %c0_i32_13 : i32
    scf.if %14 {
      %c0_14 = arith.constant 0 : index
      %c0_15 = arith.constant 0 : index
      %15 = vector.load %arg6[%c0_14, %c0_15] : memref<2x64xf32, #tpu.memory_space<vmem>>, vector<2x64xf32>
      %c0_16 = arith.constant 0 : index
      %c0_17 = arith.constant 0 : index
      %16 = vector.load %arg7[%c0_16, %c0_17] : memref<2x64xf32, #tpu.memory_space<vmem>>, vector<2x64xf32>
      %cst_18 = arith.constant 3.906250e-03 : f32
      %17 = vector.broadcast %cst_18 : f32 to vector<2x64xf32>
      %18 = arith.mulf %16, %17 : vector<2x64xf32>
      %19 = tpu.concatenate %15, %18 in 0 : vector<2x64xf32>, vector<2x64xf32> -> vector<4x64xf32>
      %c0_19 = arith.constant 0 : index
      %c0_20 = arith.constant 0 : index
      %20 = vector.load %arg3[%c0_19, %c0_20] : memref<64x4xf32, #tpu.memory_space<vmem>>, vector<64x4xf32>
      %cst_21 = arith.constant dense<0.000000e+00> : vector<4x4xf32>
      %21 = tpu.matmul %19, %20, %cst_21 {dimension_numbers = #tpu.dot_dimension_numbers<[1], [0], [0], [1], [0, 0, 1, 1], [], []>} : vector<4x64xf32>, vector<64x4xf32>, vector<4x4xf32> -> vector<4x4xf32>
      %cst_22 = arith.constant 0.000000e+00 : f32
      %22 = vector.broadcast %cst_22 : f32 to vector<4x4xf32>
      %23 = arith.maximumf %21, %22 : vector<4x4xf32>
      %c0_23 = arith.constant 0 : index
      %c0_24 = arith.constant 0 : index
      %24 = vector.load %arg4[%c0_23, %c0_24] : memref<4x64xf32, #tpu.memory_space<vmem>>, vector<4x64xf32>
      %cst_25 = arith.constant dense<0.000000e+00> : vector<4x64xf32>
      %25 = tpu.matmul %23, %24, %cst_25 {dimension_numbers = #tpu.dot_dimension_numbers<[1], [0], [0], [1], [0, 0, 1, 1], [], []>} : vector<4x4xf32>, vector<4x64xf32>, vector<4x64xf32> -> vector<4x64xf32>
      %26 = vector.extract_strided_slice %25 {offsets = [0, 0], sizes = [2, 64], strides = [1, 1]} : vector<4x64xf32> to vector<2x64xf32>
      %27 = vector.extract_strided_slice %25 {offsets = [2, 0], sizes = [2, 64], strides = [1, 1]} : vector<4x64xf32> to vector<2x64xf32>
      %28 = arith.addf %26, %27 : vector<2x64xf32>
      %29 = arith.negf %28 : vector<2x64xf32>
      %30 = math.exp %29 : vector<2x64xf32>
      %cst_26 = arith.constant 1.000000e+00 : f32
      %31 = vector.broadcast %cst_26 : f32 to vector<2x64xf32>
      %32 = arith.addf %31, %30 : vector<2x64xf32>
      %33 = arith.divf %31, %32 : vector<2x64xf32>
      %c0_27 = arith.constant 0 : index
      %c0_28 = arith.constant 0 : index
      %c0_29 = arith.constant 0 : index
      %34 = vector.load %arg5[%c0_27, %c0_28, %c0_29] : memref<2x1x64xf32, #tpu.memory_space<vmem>>, vector<2x1x64xf32>
      %35 = vector.shape_cast %34 : vector<2x1x64xf32> to vector<2x64xf32>
      %36 = vector.shape_cast %33 : vector<2x64xf32> to vector<2x1x64xf32>
      tpu.vector_store %arg5[%c0_27, %c0_28, %c0_29], %36 {strides = array<i32>} : memref<2x1x64xf32, #tpu.memory_space<vmem>>, vector<2x1x64xf32>,
    } else {
    }
    return
  }
  func.func @transform_0(%arg0: i32, %arg1: i32) -> (i32, i32, i32) {
    %c0_i32 = arith.constant 0 : i32
    %c0_i32_0 = arith.constant 0 : i32
    return %arg0, %c0_i32, %arg1 : i32, i32, i32
  }
  func.func @transform_1(%arg0: i32, %arg1: i32) -> (i32, i32) {
    %c0_i32 = arith.constant 0 : i32
    %c0_i32_0 = arith.constant 0 : i32
    %c0_i32_1 = arith.constant 0 : i32
    return %c0_i32, %c0_i32_0 : i32, i32
  }
  func.func @transform_2(%arg0: i32, %arg1: i32) -> (i32, i32) {
    %c0_i32 = arith.constant 0 : i32
    %c0_i32_0 = arith.constant 0 : i32
    %c0_i32_1 = arith.constant 0 : i32
    return %c0_i32, %c0_i32_0 : i32, i32
  }
  func.func @transform_3(%arg0: i32, %arg1: i32) -> (i32, i32, i32) {
    %c0_i32 = arith.constant 0 : i32
    %c0_i32_0 = arith.constant 0 : i32
    %c0_i32_1 = arith.constant 0 : i32
    return %arg0, %c0_i32, %c0_i32_0 : i32, i32, i32
  }
}

</mosaic_0001>

<bundles_post_ra>
// kernel: tpu_custom_call.1
= control target key start
LH: loop header
LB: loop body
LE: loop exit
PB: predicated region body
PF: predicated region fallthrough
CT: control target
= control target key end

     0   :  { %8 = vsyncpa [#allocation5], 0  ;;  %s880_s0 = inlined_call_operand.hbm [shape: f32[2,64,256], index: 0, kind: input, shape index: {}]   ;;  %s881_s1 = inlined_call_operand.vmem [shape: f32[64,4], index: 1, kind: input, shape index: {}]   ;;  %s882_s2 = inlined_call_operand.vmem [shape: f32[4,64], index: 2, kind: input, shape index: {}]   ;;  %s883_s3 = inlined_call_operand.hbm [shape: f32[2,1,64], index: 3, kind: output, shape index: {}]  }
   0x1   :  { %9 = vsyncpa [#allocation6], 0  ;;  %s704_s12 = smov [#allocation4]  }
   0x2   :  { %s15_s13 = sshll.u32 %s704_s12, 4  ;;  %s16_s13 = int_to_ptr.vmem [resolvable:$true] %s15_s13 }
   0x3   :  { %s668_s14 = scalar_lea.vmem %s16_s13, 4096  ;;  %p673_p1 = scmp.lt.s32.totalorder %s16_s13, %s16_s13 }
   0x4   :  { %p669_p0 = scmp.ne.s32.totalorder %s16_s13, %s668_s14  ;;  %p674_p2 = scmp.lt.s32.totalorder %s668_s14, %s668_s14 }
   0x6   :  { %p675_p3 = por %p674_p2, %p673_p1 }
   0x8   :  { %p676_p4 = pnand %p675_p3, %p669_p0 }
   0xa   :  { %679 = shalt.err (!%p676_p4)
}
   0xb   :  { %s705_s15 = smov 256   ;;  %s706_s16 = smov 16  }
   0xc   :  { %21 = dma.hbm_to_vmem [thread:$0]  %s880_s0, 4096, %s16_s13, [#allocation5], %s705_s15, %s705_s15, %s706_s16  }
   0xd   :  { %700 = dma.done.wait [#allocation5], 4096  }
   0xe   :  { %701 = vsyncadd [#allocation5], 4294963200  ;;  %v52_v0 = vld [vmem:[#allocation4 + $0x80] sm:$0xff]  ;;  %v53_v1 = vld [vmem:[#allocation4 + $0x88] sm:$0xff]  ;;  %vm33_vm0 = vcmask 517120   ;;  %v707_v60 = vmov 0.0  }
   0xf   :  { %v36_v2 = vld [vmem:[#allocation4] sm:$0xff]  ;;  %v258_v3 = vadd.f32 %v53_v1, %v52_v0  ;;  %v37_v4 = vld [vmem:[#allocation4 + $0x8] sm:$0xff]  ;;  %v54_v5 = vld [vmem:[#allocation4 + $0x90] sm:$0xff]  ;;  %v93_v33 = vmax.f32 %v52_v0, %v53_v1  ;;  %35 = vst.msk [vmem:[#allocation3] sm:$0x3] %vm33_vm0, %v707_v60  ;;  %623 = vmatprep.subr.mxu0 %v707_v60  ;;  %642 = vmatprep.subr.mxu1 %v707_v60  ;;  %v708_v1 = vmov -inf  }
  0x10   :  { %v55_v6 = vld [vmem:[#allocation4 + $0x98] sm:$0xff]  ;;  %v234_v7 = vadd.f32 %v37_v4, %v36_v2  ;;  %v38_v8 = vld [vmem:[#allocation4 + $0x10] sm:$0xff]  ;;  %v56_v12 = vld [vmem:[#allocation4 + $0xa0] sm:$0xff]  ;;  %v69_v31 = vmax.f32 %v36_v2, %v37_v4  ;;  %34 = vst.msk [vmem:[#allocation2] sm:$0x3] %vm33_vm0, %v708_v1  ;;  %vm709_vm1 = vmmov 0  }
  0x11   :  { %v39_v9 = vld [vmem:[#allocation4 + $0x18] sm:$0xff]  ;;  %259 = vadd.xlane.f32.xlu1 %v258_v3  ;;  %v261_v10 = vadd.f32 %v55_v6, %v54_v5  ;;  %v57_v13 = vld [vmem:[#allocation4 + $0xa8] sm:$0xff]  ;;  %v40_v14 = vld [vmem:[#allocation4 + $0x20] sm:$0xff]  ;;  %v96_v32 = vmax.f32 %v54_v5, %v55_v6  ;;  %639 = vmatprep.mubr.msk.f32.mxu0 %vm709_vm1, %v707_v60  ;;  %vm144_vm2 = vcmask 130112   ;;  %vm151_vm3 = vcmask 195712  }
  0x12   :  { %235 = vadd.xlane.f32.xlu0 %v234_v7  ;;  %v237_v11 = vadd.f32 %v39_v9, %v38_v8  ;;  %v41_v15 = vld [vmem:[#allocation4 + $0x28] sm:$0xff]  ;;  %v264_v16 = vadd.f32 %v57_v13, %v56_v12  ;;  %v58_v18 = vld [vmem:[#allocation4 + $0xb0] sm:$0xff]  ;;  %v59_v19 = vld [vmem:[#allocation4 + $0xb8] sm:$0xff]  ;;  %v72_v30 = vmax.f32 %v38_v8, %v39_v9  ;;  %v99_v40 = vmax.f32 %v56_v12, %v57_v13 }
  0x13   :  { %v240_v17 = vadd.f32 %v41_v15, %v40_v14  ;;  %v42_v20 = vld [vmem:[#allocation4 + $0x30] sm:$0xff]  ;;  %v43_v21 = vld [vmem:[#allocation4 + $0x38] sm:$0xff]  ;;  %v267_v22 = vadd.f32 %v59_v19, %v58_v18  ;;  %v60_v24 = vld [vmem:[#allocation4 + $0xc0] sm:$0xff]  ;;  %v75_v41 = vmax.f32 %v40_v14, %v41_v15  ;;  %v102_v48 = vmax.f32 %v58_v18, %v59_v19  ;;  %644 = vmatprep.mubr.msk.f32.mxu1 %vm709_vm1, %v707_v60 }
  0x14   :  { %v243_v23 = vadd.f32 %v43_v21, %v42_v20  ;;  %v61_v25 = vld [vmem:[#allocation4 + $0xc8] sm:$0xff]  ;;  %v44_v26 = vld [vmem:[#allocation4 + $0x40] sm:$0xff]  ;;  %v62_v34 = vld [vmem:[#allocation4 + $0xd0] sm:$0xff]  ;;  %v78_v49 = vmax.f32 %v42_v20, %v43_v21  ;;  %vm158_vm4 = vcmask 261312   ;;  %vm165_vm5 = vcmask 326912  }
  0x15   :  { %262 = vadd.xlane.f32.xlu1 %v261_v10  ;;  %v45_v27 = vld [vmem:[#allocation4 + $0x48] sm:$0xff]  ;;  %v270_v28 = vadd.f32 %v61_v25, %v60_v24  ;;  %v63_v35 = vld [vmem:[#allocation4 + $0xd8] sm:$0xff]  ;;  %v46_v36 = vld [vmem:[#allocation4 + $0x50] sm:$0xff]  ;;  %v105_v56 = vmax.f32 %v60_v24, %v61_v25  ;;  %vm172_vm6 = vcmask 392512   ;;  %vm179_vm7 = vcmask 458112  }
  0x16   :  { %238 = vadd.xlane.f32.xlu0 %v237_v11  ;;  %v246_v29 = vadd.f32 %v45_v27, %v44_v26  ;;  %v47_v37 = vld [vmem:[#allocation4 + $0x58] sm:$0xff]  ;;  %v273_v38 = vadd.f32 %v63_v35, %v62_v34  ;;  %v64_v42 = vld [vmem:[#allocation4 + $0xe0] sm:$0xff]  ;;  %v65_v43 = vld [vmem:[#allocation4 + $0xe8] sm:$0xff]  ;;  %v81_v57 = vmax.f32 %v44_v26, %v45_v27  ;;  %v108_v58 = vmax.f32 %v62_v34, %v63_v35 }
  0x17   :  { %v249_v39 = vadd.f32 %v47_v37, %v46_v36  ;;  %v48_v44 = vld [vmem:[#allocation4 + $0x60] sm:$0xff]  ;;  %v49_v45 = vld [vmem:[#allocation4 + $0x68] sm:$0xff]  ;;  %v276_v46 = vadd.f32 %v65_v43, %v64_v42  ;;  %v66_v50 = vld [vmem:[#allocation4 + $0xf0] sm:$0xff]  ;;  %v84_v59 = vmax.f32 %v46_v36, %v47_v37  ;;  %v111_v61 = vmax.f32 %v64_v42, %v65_v43 }
  0x18   :  { %v252_v47 = vadd.f32 %v49_v45, %v48_v44  ;;  %v67_v51 = vld [vmem:[#allocation4 + $0xf8] sm:$0xff]  ;;  %v50_v52 = vld [vmem:[#allocation4 + $0x70] sm:$0xff]  ;;  %v87_v62 = vmax.f32 %v48_v44, %v49_v45  ;;  %v396_v4 = vld [vmem:[%s881_s1 + $0x28] sm:$0xff]  ;;  %vm186_vm8 = vcmask 523712   ;;  %vm227_vm9 = vcmask 1041409  }
  0x19   :  { %265 = vadd.xlane.f32.xlu1 %v264_v16  ;;  %v51_v53 = vld [vmem:[#allocation4 + $0x78] sm:$0xff]  ;;  %v279_v54 = vadd.f32 %v67_v51, %v66_v50  ;;  %v114_v63 = vmax.f32 %v66_v50, %v67_v51  ;;  %v397_v3 = vld [vmem:[%s881_s1 + $0x30] sm:$0xff]  ;;  %v392_v8 = vld [vmem:[%s881_s1 + $0x8] sm:$0xff]  ;;  %vm389_vm10 = vcmask 1041408   ;;  %vm399_vm11 = vcmask 523264  }
  0x1a   :  { %241 = vadd.xlane.f32.xlu0 %v240_v17  ;;  %v255_v55 = vadd.f32 %v51_v53, %v50_v52  ;;  %v90_v0 = vmax.f32 %v50_v52, %v51_v53  ;;  %v398_v2 = vld [vmem:[%s881_s1 + $0x38] sm:$0xff]  ;;  %v395_v5 = vld [vmem:[%s881_s1 + $0x20] sm:$0xff]  ;;  %v393_v7 = vld [vmem:[%s881_s1 + $0x10] sm:$0xff]  ;;  %vm479_vm12 = vcmask 1043456   ;;  %vm475_vm13 = vcmask 31744  }
  0x1b   :  { %624 = vmatpush3.msra.mxu0 %v398_v2  ;;  %v394_v6 = vld [vmem:[%s881_s1 + $0x18] sm:$0xff]  ;;  %v391_v9 = vld [vmem:[%s881_s1] sm:$0xff]  ;;  %vm588_vm14 = vcmask 516096  }
  0x1c   :  { %625 = vmatprep.subr.mxu0 %v707_v60 }
  0x1d   :  { %268 = vadd.xlane.f32.xlu1 %v267_v22  ;;  %626 = vmatpush3.msra.mxu0 %v397_v3  ;;  %v133_v22 = vlaneseq }
  0x1e   :  { %244 = vadd.xlane.f32.xlu0 %v243_v23  ;;  %627 = vmatprep.subr.mxu0 %v707_v60 }
  0x1f   :  { %628 = vmatpush3.msra.mxu0 %v396_v4  ;;  %v134_v25 = vand.u32 127, %v133_v22 }
  0x20   :  { %629 = vmatprep.subr.mxu0 %v707_v60 }
  0x21   :  { %271 = vadd.xlane.f32.xlu1 %v270_v28  ;;  %630 = vmatpush3.msra.mxu0 %v395_v5  ;;  %v139_v27 = vadd.s32 4294967288, %v134_v25  ;;  %v167_v35 = vadd.s32 4294967256, %v134_v25 }
  0x22   :  { %247 = vadd.xlane.f32.xlu0 %v246_v29  ;;  %631 = vmatprep.subr.mxu0 %v707_v60  ;;  %v146_v29 = vadd.s32 4294967280, %v134_v25 }
  0x23   :  { %632 = vmatpush3.msra.mxu0 %v394_v6 }
  0x24   :  { %633 = vmatprep.subr.mxu0 %v707_v60 }
  0x25   :  { %73 = vmax.xlane.f32.xlu1 %v72_v30  ;;  %634 = vmatpush3.msra.mxu0 %v393_v7  ;;  %v771_v30 = vshrl.u32 %v133_v22, 7 }
  0x26   :  { %70 = vmax.xlane.f32.xlu0 %v69_v31  ;;  %635 = vmatprep.subr.mxu0 %v707_v60  ;;  %v153_v31 = vadd.s32 4294967272, %v134_v25 }
  0x27   :  { %636 = vmatpush3.msra.mxu0 %v392_v8  ;;  %v776_v34 = vsub.s32 %v139_v27, %v771_v30  ;;  %v781_v37 = vsub.s32 %v146_v29, %v771_v30  ;;  %v794_v44 = vsub.s32 %v167_v35, %v771_v30 }
  0x28   :  { %637 = vmatprep.subr.mxu0 %v707_v60 }
  0x29   :  { %97 = vmax.xlane.f32.xlu1 %v96_v32  ;;  %638 = vmatpush3.msra.mxu0 %v391_v9  ;;  %v160_v32 = vadd.s32 4294967264, %v134_v25 }
  0x2a   :  { %94 = vmax.xlane.f32.xlu0 %v93_v33 }
  0x2d   :  { %274 = vadd.xlane.f32.xlu1 %v273_v38  ;;  %v174_v38 = vadd.s32 4294967248, %v134_v25 }
  0x2e   :  { %250 = vadd.xlane.f32.xlu0 %v249_v39  ;;  %v784_v39 = vsub.s32 %v134_v25, %v771_v30 }
  0x31   :  { %100 = vmax.xlane.f32.xlu1 %v99_v40  ;;  %v787_v40 = vsub.s32 %v153_v31, %v771_v30 }
  0x32   :  { %76 = vmax.xlane.f32.xlu0 %v75_v41  ;;  %v790_v41 = vsub.s32 %v160_v32, %v771_v30 }
  0x35   :  { %277 = vadd.xlane.f32.xlu1 %v276_v46  ;;  %v181_v46 = vadd.s32 4294967240, %v134_v25 }
  0x36   :  { %253 = vadd.xlane.f32.xlu0 %v252_v47 }
  0x39   :  { %103 = vmax.xlane.f32.xlu1 %v102_v48 }
  0x3a   :  { %79 = vmax.xlane.f32.xlu0 %v78_v49  ;;  %v799_v49 = vsub.s32 %v174_v38, %v771_v30 }
  0x3d   :  { %280 = vadd.xlane.f32.xlu1 %v279_v54 }
  0x3e   :  { %256 = vadd.xlane.f32.xlu0 %v255_v55 }
  0x41   :  { %106 = vmax.xlane.f32.xlu1 %v105_v56 }
  0x42   :  { %82 = vmax.xlane.f32.xlu0 %v81_v57 }
  0x45   :  { %109 = vmax.xlane.f32.xlu1 %v108_v58 }
  0x46   :  { %85 = vmax.xlane.f32.xlu0 %v84_v59 }
  0x49   :  { %112 = vmax.xlane.f32.xlu1 %v111_v61  ;;  %v811_v61 = vsub.s32 %v181_v46, %v771_v30 }
  0x4a   :  { %88 = vmax.xlane.f32.xlu0 %v87_v62 }
  0x4d   :  { %115 = vmax.xlane.f32.xlu1 %v114_v63 }
  0x4e   :  { %91 = vmax.xlane.f32.xlu0 %v90_v0 }
  0x9a   :  { %v260_v10 = vpop.xlane.xlu1 %259 }
  0x9b   :  { %v236_v11 = vpop.xlane.xlu0 %235  ;;  %v340_v50 = vrot.slane %v260_v10, %v784_v39 }
  0x9c   :  { %v301_v53 = vrot.slane %v236_v11, %v784_v39 }
  0x9e   :  { %v263_v12 = vpop.xlane.xlu1 %262 }
  0x9f   :  { %v239_v13 = vpop.xlane.xlu0 %238  ;;  %v344_v43 = vrot.slane %v263_v12, %v776_v34 }
  0xa0   :  { %v305_v47 = vrot.slane %v239_v13, %v776_v34 }
  0xa1   :  { %v345_v57 = vsel %vm144_vm2, %v344_v43, %v340_v50 }
  0xa2   :  { %v266_v14 = vpop.xlane.xlu1 %265  ;;  %v306_v62 = vsel %vm144_vm2, %v305_v47, %v301_v53 }
  0xa3   :  { %v242_v15 = vpop.xlane.xlu0 %241  ;;  %v349_v48 = vrot.slane %v266_v14, %v781_v37 }
  0xa4   :  { %v310_v51 = vrot.slane %v242_v15, %v781_v37 }
  0xa5   :  { %v350_v63 = vsel %vm151_vm3, %v349_v48, %v345_v57 }
  0xa6   :  { %v269_v16 = vpop.xlane.xlu1 %268  ;;  %v311_v2 = vsel %vm151_vm3, %v310_v51, %v306_v62 }
  0xa7   :  { %v245_v17 = vpop.xlane.xlu0 %244  ;;  %v354_v52 = vrot.slane %v269_v16, %v787_v40 }
  0xa8   :  { %v315_v54 = vrot.slane %v245_v17, %v787_v40  ;;  %v233_v17 = vld [vmem:[#allocation3] sm:$0x3] }
  0xa9   :  { %v355_v3 = vsel %vm158_vm4, %v354_v52, %v350_v63 }
  0xaa   :  { %v272_v18 = vpop.xlane.xlu1 %271  ;;  %v316_v5 = vsel %vm158_vm4, %v315_v54, %v311_v2 }
  0xab   :  { %v248_v19 = vpop.xlane.xlu0 %247  ;;  %v359_v55 = vrot.slane %v272_v18, %v790_v41 }
  0xac   :  { %v320_v58 = vrot.slane %v248_v19, %v790_v41 }
  0xad   :  { %v360_v6 = vsel %vm165_vm5, %v359_v55, %v355_v3 }
  0xae   :  { %v763_v20 = vpop.xlane.xlu1 %73  ;;  %v321_v8 = vsel %vm165_vm5, %v320_v58, %v316_v5 }
  0xaf   :  { %v765_v21 = vpop.xlane.xlu0 %70  ;;  %v143_v32 = vrot.slane %v763_v20, %v776_v34 }
  0xb0   :  { %v138_v35 = vrot.slane %v765_v21, %v784_v39 }
  0xb2   :  { %v767_v23 = vpop.xlane.xlu1 %97 }
  0xb3   :  { %v769_v24 = vpop.xlane.xlu0 %94 }
  0xb4   :  { %v191_v29 = vrot.slane %v769_v24, %v784_v39  ;;  %v145_v39 = vsel %vm144_vm2, %v143_v32, %v138_v35 }
  0xb6   :  { %v275_v26 = vpop.xlane.xlu1 %274 }
  0xb7   :  { %v251_v28 = vpop.xlane.xlu0 %250  ;;  %v364_v59 = vrot.slane %v275_v26, %v794_v44 }
  0xb8   :  { %v325_v0 = vrot.slane %v251_v28, %v794_v44  ;;  %v195_v28 = vrot.slane %v767_v23, %v776_v34 }
  0xb9   :  { %v365_v9 = vsel %vm172_vm6, %v364_v59, %v360_v6  ;;  %v68_v59 = vld [vmem:[#allocation2] sm:$0x3] }
  0xba   :  { %v773_v33 = vpop.xlane.xlu1 %100  ;;  %v326_v12 = vsel %vm172_vm6, %v325_v0, %v321_v8  ;;  %v196_v46 = vsel %vm144_vm2, %v195_v28, %v191_v29 }
  0xbb   :  { %v778_v36 = vpop.xlane.xlu0 %76  ;;  %v200_v38 = vrot.slane %v773_v33, %v781_v37 }
  0xbd   :  { %v201_v33 = vsel %vm151_vm3, %v200_v38, %v196_v46 }
  0xbe   :  { %v278_v42 = vpop.xlane.xlu1 %277 }
  0xbf   :  { %v254_v45 = vpop.xlane.xlu0 %253  ;;  %v369_v1 = vrot.slane %v278_v42, %v799_v49  ;;  %v150_v42 = vrot.slane %v778_v36, %v781_v37 }
  0xc0   :  { %v330_v4 = vrot.slane %v254_v45, %v799_v49 }
  0xc1   :  { %v370_v13 = vsel %vm179_vm7, %v369_v1, %v365_v9 }
  0xc2   :  { %v104_v56 = vpop.xlane.xlu1 %103  ;;  %v331_v15 = vsel %vm179_vm7, %v330_v4, %v326_v12 }
  0xc3   :  { %v80_v60 = vpop.xlane.xlu0 %79  ;;  %v205_v43 = vrot.slane %v104_v56, %v787_v40 }
  0xc4   :  { %v157_v23 = vrot.slane %v80_v60, %v787_v40  ;;  %v152_v40 = vsel %vm151_vm3, %v150_v42, %v145_v39 }
  0xc5   :  { %v206_v47 = vsel %vm158_vm4, %v205_v43, %v201_v33 }
  0xc6   :  { %v281_v7 = vpop.xlane.xlu1 %280  ;;  %v159_v50 = vsel %vm158_vm4, %v157_v23, %v152_v40 }
  0xc7   :  { %v374_v10 = vrot.slane %v281_v7, %v811_v61  ;;  %v257_v11 = vpop.xlane.xlu0 %256 }
  0xc8   :  { %v335_v14 = vrot.slane %v257_v11, %v811_v61 }
  0xc9   :  { %v375_v16 = vsel %vm186_vm8, %v374_v10, %v370_v13 }
  0xca   :  { %v336_v18 = vsel %vm186_vm8, %v335_v14, %v331_v15  ;;  %v107_v19 = vpop.xlane.xlu1 %106  ;;  %v710_v15 = vmov 1966171168  }
  0xcb   :  { %v376_v22 = vsel %vm227_vm9, %v375_v16, %v336_v18  ;;  %v83_v25 = vpop.xlane.xlu0 %82  ;;  %v210_v45 = vrot.slane %v107_v19, %v790_v41  ;;  %v565_v16 = vunpack.c.l.s4 %v710_v15 }
  0xcc   :  { %v378_v26 = vadd.f32 %v376_v22, %v233_v17  ;;  %v164_v20 = vrot.slane %v83_v25, %v790_v41 }
  0xcd   :  { %v211_v41 = vsel %vm165_vm5, %v210_v45, %v206_v47  ;;  %v566_v17 = vunpack.c.0.s8 %v565_v16 }
  0xce   :  { %379 = vst.msk [vmem:[#allocation3] sm:$0x3] %vm33_vm0, %v378_v26  ;;  %v110_v27 = vpop.xlane.xlu1 %109  ;;  %v166_v52 = vsel %vm165_vm5, %v164_v20, %v159_v50 }
  0xcf   :  { %v86_v31 = vpop.xlane.xlu0 %85  ;;  %v215_v34 = vrot.slane %v110_v27, %v794_v44  ;;  %v569_v18 = vsub.s32 %v566_v17, %v771_v30 }
  0xd0   :  { %v171_v36 = vrot.slane %v86_v31, %v794_v44 }
  0xd1   :  { %v216_v53 = vsel %vm172_vm6, %v215_v34, %v211_v41 }
  0xd2   :  { %v113_v24 = vpop.xlane.xlu1 %112  ;;  %v173_v55 = vsel %vm172_vm6, %v171_v36, %v166_v52 }
  0xd3   :  { %v89_v21 = vpop.xlane.xlu0 %88  ;;  %v220_v37 = vrot.slane %v113_v24, %v799_v49 }
  0xd4   :  { %v178_v48 = vrot.slane %v89_v21, %v799_v49 }
  0xd5   :  { %v221_v56 = vsel %vm179_vm7, %v220_v37, %v216_v53  ;;  %v384_v0 = vld [vmem:[#allocation3] sm:$0x3] }
  0xd6   :  { %v116_v51 = vpop.xlane.xlu1 %115  ;;  %v180_v49 = vsel %vm179_vm7, %v178_v48, %v173_v55  ;;  %v385_v1 = vmul.f32 0.00390625, %v384_v0 }
  0xd7   :  { %v225_v54 = vrot.slane %v116_v51, %v811_v61  ;;  %v92_v44 = vpop.xlane.xlu0 %91 }
  0xd8   :  { %v185_v57 = vrot.slane %v92_v44, %v811_v61  ;;  %v387_v2 = vrot.slane %v385_v1, 6  ;;  %v474_v61 = vld [vmem:[%s882_s2] sm:$0xf]  ;;  %s711_s2 = smov [#allocation7]  }
  0xd9   :  { %v226_v58 = vsel %vm186_vm8, %v225_v54, %v221_v56  ;;  %643 = vmatpush3.msk.msra.mxu1 %vm479_vm12, %v474_v61  ;;  %s596_s8 = sshll.u32 %s711_s2, 4  ;;  %s597_s8 = int_to_ptr.vmem [resolvable:$true] %s596_s8 }
  0xda   :  { %v187_v60 = vsel %vm186_vm8, %v185_v57, %v180_v49  ;;  %s680_s9 = scalar_lea.vmem %s597_s8, 32  ;;  %p685_p6 = scmp.lt.s32.totalorder %s597_s8, %s597_s8 }
  0xdb   :  { %v228_v62 = vsel %vm227_vm9, %v226_v58, %v187_v60  ;;  %p681_p5 = scmp.ne.s32.totalorder %s597_s8, %s680_s9  ;;  %p686_p7 = scmp.lt.s32.totalorder %s680_s9, %s680_s9 }
  0xdc   :  { %v230_v63 = vmax.f32 %v68_v59, %v228_v62 }
  0xdd   :  { %p687_p8 = por %p686_p7, %p685_p6 }
  0xde   :  { %232 = vst.msk [vmem:[#allocation2] sm:$0x3] %vm33_vm0, %v230_v63 }
  0xdf   :  { %p688_p9 = pnand %p687_p8, %p681_p5 }
  0xe5   :  { %v383_v3 = vld [vmem:[#allocation2] sm:$0x3] }
  0xe6   :  { %v390_v4 = vsel %vm389_vm10, %v383_v3, %v387_v2 }
  0xe7   :  { %640 = vmatmul.mubr.msk.f32.vlgmr.msra.gmra.mxu0 %vm399_vm11, %v390_v4 }
 0x1a7   :  { %v469_v5 = vpop.f32.mrf.mxu0 }
 0x1a8   :  { %v473_v6 = vmax.f32 %v469_v5, 0.0 }
 0x1a9   :  { %v641_v7 = vpop.f32.mrf.mxu0 }
 0x1aa   :  { %645 = vmatmul.mubr.msk.f32.vlgmr.msra.gmra.mxu1 %vm475_vm13, %v473_v6 }
 0x26a   :  { %v549_v8 = vpop.f32.mrf.mxu1 }
 0x26b   :  { %v554_v9 = vrot.slane %v549_v8, 2 }
 0x26c   :  { %v646_v10 = vpop.f32.mrf.mxu1 }
 0x26d   :  { %v556_v11 = vadd.f32 %v554_v9, %v549_v8 }
 0x26f   :  { %v611_v12 = vmul.f32 -1.442695, %v556_v11 }
 0x271   :  { %656 = vpow2.f32 %v611_v12 }
 0x27e   :  { %v657_v13 = vpop.eup %656 }
 0x27f   :  { %v560_v14 = vadd.f32 1.0, %v657_v13 }
 0x281   :  { %658 = vrcp.f32 %v560_v14 }
 0x28e   :  { %v659_v19 = vpop.eup %658 }
 0x28f   :  { %v570_v22 = vrot.slane %v659_v19, %v569_v18 }
 0x291   :  { %v571_v25 = vcombine.high %v570_v22, %v570_v22  ;;  %v578_v26 = vrot.slane %v570_v22, %v569_v18 }
 0x293   :  { %v585_v27 = vrot.slane %v571_v25, %v569_v18  ;;  %589 = vst.msk [vmem:[#allocation7] sm:$0x1] %vm588_vm14, %v578_v26 }
 0x295   :  { %590 = vst.msk [vmem:[#allocation7 + $0x1] sm:$0x1] %vm588_vm14, %v585_v27 }
 0x296   :  { %691 = shalt.err (!%p688_p9)
}
 0x297   :  { %s712_s10 = smov 1  }
 0x298   :  { %602 = dma.vmem_to_hbm [thread:$0]  %s597_s8, 32, %s883_s3, [#allocation6], %s706_s16, %s706_s16, %s712_s10  }
 0x299   :  { %702 = dma.done.wait [#allocation6], 32  }
 0x29a   :  { %703 = vsyncadd [#allocation6], 4294967264 }
 0x29b   :  { %606 = vsyncpa [#allocation5], 1 }
 0x29c   :  { %607 = vsyncpa [#allocation6], 1 }

</bundles_post_ra>
